<compile_context>
chip_gen: v6e
topology: v6e:2x2x1
jax: 0.10.0
libtpu: 0.0.40
codegen_flags: <defaults>
</compile_context>

<pallas_src>
import functools
import numpy as np
import jax
import jax.numpy as jnp
from jax.experimental import pallas as pl
from jax.experimental.pallas import tpu as pltpu


def _round_up(x, m):
    return (x + m - 1) // m * m


def _pick_tm(M, cap=512):
    """Row tile: full dim when small (no padding), else 256/512-aligned."""
    if M <= cap:
        return M, M
    Mp = _round_up(M, 256)
    tm = 512 if Mp % 512 == 0 else 256
    return tm, Mp


def _pick_tk(K, cap=2048):
    """Whole K (single step, no accumulator) unless K is large and splittable."""
    if K <= cap or K % 128 != 0:
        return K
    for mult in range(cap // 128, 0, -1):
        t = 128 * mult
        if K % t == 0:
            return t
    return 128


def _pick_tn(N):
    if N % 256 == 0:
        return 256
    if N % 128 == 0:
        return 128
    return N          # ragged Cout (2, 21, 32, 64): full-dim block, masked store


# ---------------------------------------------------------------------------
# Pallas kernels
# ---------------------------------------------------------------------------
def _make_matmul_kernel(act, multi_k, has_res):
    def _finish(acc, s_ref, b_ref, res_ref, o_ref):
        y = acc * s_ref[...] + b_ref[...]
        if act == "leaky":
            y = jnp.where(y > 0, y, 0.1 * y)
        elif act == "relu":
            y = jnp.maximum(y, 0.0)
        elif act == "sigmoid":
            y = jax.nn.sigmoid(y)
        # act == "linear": identity
        if res_ref is not None:
            y = y + res_ref[...].astype(jnp.float32)
        o_ref[...] = y.astype(o_ref.dtype)

    if multi_k:
        def kernel(x_ref, w_ref, s_ref, b_ref, *rest):
            if has_res:
                res_ref, o_ref, acc_ref = rest
            else:
                o_ref, acc_ref = rest
                res_ref = None
            k = pl.program_id(2)

            @pl.when(k == 0)
            def _():
                acc_ref[...] = jnp.zeros_like(acc_ref)

            acc_ref[...] += jnp.dot(x_ref[...], w_ref[...],
                                    preferred_element_type=jnp.float32)

            @pl.when(k == pl.num_programs(2) - 1)
            def _():
                _finish(acc_ref[...], s_ref, b_ref, res_ref, o_ref)
    else:
        def kernel(x_ref, w_ref, s_ref, b_ref, *rest):
            if has_res:
                res_ref, o_ref = rest
            else:
                (o_ref,) = rest
                res_ref = None
            acc = jnp.dot(x_ref[...], w_ref[...],
                          preferred_element_type=jnp.float32)
            _finish(acc, s_ref, b_ref, res_ref, o_ref)
    return kernel


@functools.partial(jax.jit, static_argnames=("act", "out_dtype"))
def fused_matmul_affine_act(x, w, scale, bias, res=None, *, act,
                            out_dtype=jnp.bfloat16):
    """y = act((x @ w) * scale + bias) [+ res]; bf16 MXU inputs, f32 accumulate."""
    M, K = x.shape
    Kw, N = w.shape
    assert Kw == K
    tm, Mp = _pick_tm(M)
    tk = _pick_tk(K)
    tn = _pick_tn(N)
    nk = K // tk

    xb = x.astype(jnp.bfloat16)
    wb = w.astype(jnp.bfloat16)
    sb = scale.reshape(1, N).astype(jnp.float32)
    bb = bias.reshape(1, N).astype(jnp.float32)
    rb = None if res is None else res.astype(jnp.bfloat16)
    if Mp != M:
        xb = jnp.pad(xb, ((0, Mp - M), (0, 0)))
        if rb is not None:
            rb = jnp.pad(rb, ((0, Mp - M), (0, 0)))
    has_res = rb is not None
    args = [xb, wb, sb, bb] + ([rb] if has_res else [])

    if nk == 1:
        grid = (Mp // tm, N // tn)
        in_specs = [
            pl.BlockSpec((tm, K), lambda i, j: (i, 0)),
            pl.BlockSpec((K, tn), lambda i, j: (0, j)),
            pl.BlockSpec((1, tn), lambda i, j: (0, j)),
            pl.BlockSpec((1, tn), lambda i, j: (0, j)),
        ]
        if has_res:
            in_specs.append(pl.BlockSpec((tm, tn), lambda i, j: (i, j)))
        out_specs = pl.BlockSpec((tm, tn), lambda i, j: (i, j))
        scratch = []
        dims = ("parallel", "parallel")
    else:
        grid = (Mp // tm, N // tn, nk)
        in_specs = [
            pl.BlockSpec((tm, tk), lambda i, j, k: (i, k)),
            pl.BlockSpec((tk, tn), lambda i, j, k: (k, j)),
            pl.BlockSpec((1, tn), lambda i, j, k: (0, j)),
            pl.BlockSpec((1, tn), lambda i, j, k: (0, j)),
        ]
        if has_res:
            in_specs.append(pl.BlockSpec((tm, tn), lambda i, j, k: (i, j)))
        out_specs = pl.BlockSpec((tm, tn), lambda i, j, k: (i, j))
        scratch = [pltpu.VMEM((tm, tn), jnp.float32)]
        dims = ("parallel", "parallel", "arbitrary")

    cost = pl.CostEstimate(
        flops=2 * Mp * K * N,
        transcendentals=Mp * N if act == "sigmoid" else 0,
        bytes_accessed=(Mp * K + K * N) * 2 + 2 * N * 4
        + Mp * N * np.dtype(out_dtype).itemsize
        + (Mp * N * 2 if has_res else 0),
    )

    out = pl.pallas_call(
        _make_matmul_kernel(act, nk > 1, has_res),
        out_shape=jax.ShapeDtypeStruct((Mp, N), out_dtype),
        grid_spec=pltpu.PrefetchScalarGridSpec(
            num_scalar_prefetch=0,
            grid=grid,
            in_specs=in_specs,
            out_specs=out_specs,
            scratch_shapes=scratch,
        ),
        compiler_params=pltpu.CompilerParams(
            dimension_semantics=dims,
            vmem_limit_bytes=32 * 1024 * 1024,
        ),
        cost_estimate=cost,
    )(*args)
    return out if Mp == M else out[:M]


def _max4_kernel(a_ref, b_ref, c_ref, d_ref, o_ref):
    o_ref[...] = jnp.maximum(jnp.maximum(a_ref[...], b_ref[...]),
                             jnp.maximum(c_ref[...], d_ref[...]))


@jax.jit
def maxpool2x2(x):
    # x: NHWC, even H and W.  Tiled, pipelined elementwise max-of-4.
    N, H, W, C = x.shape
    Ho, Wo = H // 2, W // 2
    M = N * Ho * Wo
    a = x[:, 0::2, 0::2, :].reshape(M, C)
    b = x[:, 0::2, 1::2, :].reshape(M, C)
    c = x[:, 1::2, 0::2, :].reshape(M, C)
    d = x[:, 1::2, 1::2, :].reshape(M, C)
    tm, Mp = _pick_tm(M)
    if Mp != M:
        pads = ((0, Mp - M), (0, 0))
        a, b, c, d = (jnp.pad(t, pads) for t in (a, b, c, d))
    out = pl.pallas_call(
        _max4_kernel,
        out_shape=jax.ShapeDtypeStruct((Mp, C), x.dtype),
        grid=(Mp // tm,),
        in_specs=[pl.BlockSpec((tm, C), lambda i: (i, 0))] * 4,
        out_specs=pl.BlockSpec((tm, C), lambda i: (i, 0)),
        compiler_params=pltpu.CompilerParams(
            dimension_semantics=("parallel",)),
    )(a, b, c, d)
    return out[:M].reshape(N, Ho, Wo, C)


# ---------------------------------------------------------------------------
# Glue: im2col (K padded to 128 inside the single concat), upsample
# ---------------------------------------------------------------------------
def im2col(x, k, stride, pad, k_align=128):
    if pad:
        x = jnp.pad(x, ((0, 0), (pad, pad), (pad, pad), (0, 0)))
    N, Hp, Wp, C = x.shape
    Ho = (Hp - k) // stride + 1
    Wo = (Wp - k) // stride + 1
    cols = []
    for di in range(k):
        for dj in range(k):
            cols.append(x[:, di:di + stride * Ho:stride,
                          dj:dj + stride * Wo:stride, :])
    K = k * k * C
    Kp = _round_up(K, k_align)
    if Kp != K:
        cols.append(jnp.zeros((N, Ho, Wo, Kp - K), x.dtype))
    patches = cols[0] if len(cols) == 1 else jnp.concatenate(cols, axis=-1)
    return patches.reshape(N * Ho * Wo, Kp), Ho, Wo


def upsample_nearest2x(x):
    return jnp.repeat(jnp.repeat(x, 2, axis=1), 2, axis=2)


# ---------------------------------------------------------------------------
# Deterministic parameter generation (weights pre-shaped/padded + bf16 once)
# ---------------------------------------------------------------------------
class ParamGen:
    def __init__(self, seed=0):
        self._key = jax.random.PRNGKey(seed)
        self._i = 0

    def normal(self, shape, scale=1.0):
        self._i += 1
        k = jax.random.fold_in(self._key, self._i)
        return scale * jax.random.normal(k, shape, dtype=jnp.float32)


def _pack_conv_weight(w_kkcincout, k, cin, cout):
    K = k * k * cin
    Kp = _round_up(K, 128)
    w = w_kkcincout.reshape(K, cout)
    if Kp != K:
        w = jnp.pad(w, ((0, Kp - K), (0, 0)))
    return w.astype(jnp.bfloat16)


def init_conv_bn(pg, cin, cout, k):
    # conv (bias=False) + BatchNorm (inference-mode, folded into scale/bias)
    fan = cin * k * k
    w = pg.normal((k, k, cin, cout), 1.0 / np.sqrt(fan))
    return {"w": _pack_conv_weight(w, k, cin, cout),
            "scale": (1.0 + 0.05 * pg.normal((cout,))).reshape(1, cout),
            "bias": (0.01 * pg.normal((cout,))).reshape(1, cout),
            "k": k}


def init_conv_bias(pg, cin, cout, k):
    # plain conv with bias, no BN
    fan = cin * k * k
    w = pg.normal((k, k, cin, cout), 1.0 / np.sqrt(fan))
    return {"w": _pack_conv_weight(w, k, cin, cout),
            "scale": jnp.ones((1, cout), jnp.float32),
            "bias": (0.01 * pg.normal((cout,))).reshape(1, cout),
            "k": k}


def apply_conv(p, x, *, stride=1, act, residual=None, out_dtype=jnp.bfloat16):
    k = p["k"]
    pad = (k - 1) // 2
    cols, Ho, Wo = im2col(x, k, stride, pad)
    res2d = None if residual is None else residual.reshape(-1, residual.shape[-1])
    y = fused_matmul_affine_act(cols, p["w"], p["scale"], p["bias"], res2d,
                                act=act, out_dtype=out_dtype)
    return y.reshape(x.shape[0], Ho, Wo, -1)


# ---------------------------------------------------------------------------
# UNet pieces (DoubleConv / Down / Up / OutConv), bilinear=False
# ---------------------------------------------------------------------------
def init_double_conv(pg, cin, cout, cmid=None):
    cmid = cmid or cout
    return [init_conv_bn(pg, cin, cmid, 3), init_conv_bn(pg, cmid, cout, 3)]


def apply_double_conv(ps, x):
    x = apply_conv(ps[0], x, act="relu")
    return apply_conv(ps[1], x, act="relu")


def init_down(pg, cin, cout):
    return init_double_conv(pg, cin, cout)


def apply_down(ps, x):
    return apply_double_conv(ps, maxpool2x2(x))


def init_up(pg, cin, cout):
    # ConvTranspose2d(cin, cin//2, kernel=2, stride=2, bias=True) + DoubleConv.
    # The 4 (kh,kw) taps are fused into a single (Cin, 4*co) matmul weight.
    co = cin // 2
    tw = pg.normal((2, 2, cin, co), 1.0 / np.sqrt(cin * 4))        # (kh,kw,cin,co)
    tw2 = jnp.transpose(tw, (2, 0, 1, 3)).reshape(cin, 4 * co).astype(jnp.bfloat16)
    tb = 0.01 * pg.normal((co,))
    return {"tw2": tw2,
            "tb4": jnp.tile(tb, 4).reshape(1, 4 * co),
            "s4": jnp.ones((1, 4 * co), jnp.float32),
            "co": co,
            "dc": init_double_conv(pg, cin, cout)}


def apply_up(p, x1, x2):
    # x1: deep feature (to be upsampled by transpose-conv), x2: skip connection
    N, H, W, Cin = x1.shape
    co = p["co"]
    y = fused_matmul_affine_act(x1.reshape(N * H * W, Cin), p["tw2"],
                                p["s4"], p["tb4"], act="linear")
    up = y.reshape(N, H, W, 2, 2, co).transpose(0, 1, 3, 2, 4, 5)
    up = up.reshape(N, 2 * H, 2 * W, co)
    x = jnp.concatenate([x2, up], axis=-1)       # torch.cat([x2, x1], dim=1)
    return apply_double_conv(p["dc"], x)


# ---------------------------------------------------------------------------
# darknet53 backbone (residual add fused into the 3x3 conv epilogue)
# ---------------------------------------------------------------------------
def init_darknet(pg):
    def stage(cin, cout, nblocks):
        s = {"ds": init_conv_bn(pg, cin, cout, 3), "blocks": []}
        for _ in range(nblocks):
            s["blocks"].append([init_conv_bn(pg, cout, cout // 2, 1),
                                init_conv_bn(pg, cout // 2, cout, 3)])
        return s
    return {"conv1": init_conv_bn(pg, 3, 32, 3),
            "layers": [stage(32, 64, 1), stage(64, 128, 2), stage(128, 256, 8),
                       stage(256, 512, 8), stage(512, 1024, 4)]}


def apply_darknet(d, x):
    x = apply_conv(d["conv1"], x, act="leaky")
    outs = []
    for s in d["layers"]:
        x = apply_conv(s["ds"], x, stride=2, act="leaky")
        for blk in s["blocks"]:
            r = apply_conv(blk[0], x, act="leaky")
            x = apply_conv(blk[1], r, act="leaky", residual=x)   # fused x + f(x)
        outs.append(x)
    return outs[2], outs[3], outs[4]   # out3 (256,/8), out4 (512,/16), out5 (1024,/32)


# ---------------------------------------------------------------------------
# YOLO heads (make_last_layers)
# ---------------------------------------------------------------------------
def init_last_layers(pg, filters_list, in_filters, out_filter):
    layers = [
        init_conv_bn(pg, in_filters, filters_list[0], 1),
        init_conv_bn(pg, filters_list[0], filters_list[1], 3),
        init_conv_bn(pg, filters_list[1], filters_list[0], 1),
        init_conv_bn(pg, filters_list[0], filters_list[1], 3),
        init_conv_bn(pg, filters_list[1], filters_list[0], 1),
        init_conv_bn(pg, filters_list[0], filters_list[1], 3),
    ]
    final = init_conv_bias(pg, filters_list[1], out_filter, 1)
    return {"layers": layers, "final": final}


def apply_last_layers_branch(p, x):      # last_layer[:5]
    for l in p["layers"][:5]:
        x = apply_conv(l, x, act="leaky")
    return x


def apply_last_layers_head(p, x):        # last_layer[5:]
    x = apply_conv(p["layers"][5], x, act="leaky")
    return apply_conv(p["final"], x, act="linear", out_dtype=jnp.float32)


# ---------------------------------------------------------------------------
# YoloBody
# ---------------------------------------------------------------------------
def init_yolobody(pg, n_channels, n_classes, anchors_mask, num_classes):
    p = {}
    p["inc"] = init_double_conv(pg, n_channels, 64)
    p["down1"] = init_down(pg, 64, 128)
    p["down2"] = init_down(pg, 128, 256)
    p["down3"] = init_down(pg, 256, 512)
    p["down4"] = init_down(pg, 512, 1024)
    p["up1"] = init_up(pg, 1024, 512)
    p["up2"] = init_up(pg, 512, 256)
    p["up3"] = init_up(pg, 256, 128)
    p["up4"] = init_up(pg, 128, 64)
    p["outc"] = init_conv_bias(pg, 64, n_classes, 1)
    p["backbone"] = init_darknet(pg)
    out_filters = [64, 128, 256, 512, 1024]
    p["ll0"] = init_last_layers(pg, [512, 1024], out_filters[-1],
                                len(anchors_mask[0]) * (num_classes + 5))
    p["ll1_conv"] = init_conv_bn(pg, 512, 256, 1)
    p["ll1"] = init_last_layers(pg, [256, 512], out_filters[-2] + 256,
                                len(anchors_mask[1]) * (num_classes + 5))
    p["ll2_conv"] = init_conv_bn(pg, 256, 128, 1)
    p["ll2"] = init_last_layers(pg, [128, 256], out_filters[-3] + 128,
                                len(anchors_mask[2]) * (num_classes + 5))
    return p


def yolobody_forward(p, x_nchw):
    x = jnp.transpose(x_nchw, (0, 2, 3, 1)).astype(jnp.bfloat16)   # NCHW -> NHWC bf16

    # UNet encoder
    x1 = apply_double_conv(p["inc"], x)
    x2 = apply_down(p["down1"], x1)
    x3 = apply_down(p["down2"], x2)
    x4 = apply_down(p["down3"], x3)
    x5 = apply_down(p["down4"], x4)

    # darknet53 backbone
    x2_, x1_, x0_ = apply_darknet(p["backbone"], x)

    # control_AFS_16 / control_AFS8 are None -> skipped (default forward path)

    # UNet decoder
    up1 = apply_up(p["up1"], x5, x4)
    up2 = apply_up(p["up2"], up1, x3)
    up3 = apply_up(p["up3"], up2, x2)
    up4 = apply_up(p["up4"], up3, x1)
    enhance_out = apply_conv(p["outc"], up4, act="sigmoid",
                             out_dtype=jnp.float32)               # sigmoid fused

    # YOLO heads
    out0_branch = apply_last_layers_branch(p["ll0"], x0_)
    out0 = apply_last_layers_head(p["ll0"], out0_branch)

    x1_in = apply_conv(p["ll1_conv"], out0_branch, act="leaky")
    x1_in = upsample_nearest2x(x1_in)
    x1_in = jnp.concatenate([x1_in, x1_], axis=-1)
    out1_branch = apply_last_layers_branch(p["ll1"], x1_in)
    out1 = apply_last_layers_head(p["ll1"], out1_branch)

    x2_in = apply_conv(p["ll2_conv"], out1_branch, act="leaky")
    x2_in = upsample_nearest2x(x2_in)
    x2_in = jnp.concatenate([x2_in, x2_], axis=-1)
    out2_branch = apply_last_layers_branch(p["ll2"], x2_in)
    out2 = apply_last_layers_head(p["ll2"], out2_branch)

    to_nchw = lambda t: jnp.transpose(t, (0, 3, 1, 2))
    return (to_nchw(enhance_out), to_nchw(out0), to_nchw(out1), to_nchw(out2))


if __name__ == "__main__":
    n_channels, n_classes, num_classes = 3, 2, 2
    anchors_mask = [[6, 7, 8], [3, 4, 5], [0, 1, 2]]

    pg = ParamGen(0)
    params = init_yolobody(pg, n_channels, n_classes, anchors_mask, num_classes)

    # small input: batch=1, NCHW, 32x32 (min spatial for the /32 darknet stride)
    x = jax.random.normal(jax.random.PRNGKey(0), (1, n_channels, 32, 32),
                          dtype=jnp.float32)

    outs = yolobody_forward(params, x)
    outs = jax.block_until_ready(outs)

    # shape sanity: (1,2,32,32), (1,21,1,1), (1,21,2,2), (1,21,4,4)
    assert outs[0].shape == (1, n_classes, 32, 32)
    assert outs[1].shape == (1, 3 * (num_classes + 5), 1, 1)
    assert outs[2].shape == (1, 3 * (num_classes + 5), 2, 2)
    assert outs[3].shape == (1, 3 * (num_classes + 5), 4, 4)
    print("KERNEL_OK")
</pallas_src>

<mosaic_0001>
module attributes {stable_mosaic.version = 11 : i64} {
  func.func @kernel(%arg0: i32, %arg1: i32, %arg2: memref<512x128xbf16, #tpu.memory_space<vmem>>, %arg3: memref<128x64xbf16, #tpu.memory_space<vmem>>, %arg4: memref<1x64xf32, #tpu.memory_space<vmem>>, %arg5: memref<1x64xf32, #tpu.memory_space<vmem>>, %arg6: memref<512x64xbf16, #tpu.memory_space<vmem>>) attributes {dimension_semantics = [#tpu.dimension_semantics<parallel>, #tpu.dimension_semantics<parallel>], iteration_bounds = array<i64: 2, 1>, scalar_prefetch = 0 : i64, scratch_operands = 0 : i64, tpu.core_type = #tpu.core_type<tc>, window_params = [{transform_indices = @transform_0, window_bounds = array<i64: 512, 128>}, {transform_indices = @transform_1, window_bounds = array<i64: 128, 64>}, {transform_indices = @transform_2, window_bounds = array<i64: 1, 64>}, {transform_indices = @transform_3, window_bounds = array<i64: 1, 64>}, {transform_indices = @transform_4, window_bounds = array<i64: 512, 64>}]} {
    %c0 = arith.constant 0 : index
    %c0_0 = arith.constant 0 : index
    %0 = vector.load %arg2[%c0, %c0_0] : memref<512x128xbf16, #tpu.memory_space<vmem>>, vector<512x128xbf16>
    %c0_1 = arith.constant 0 : index
    %c0_2 = arith.constant 0 : index
    %1 = vector.load %arg3[%c0_1, %c0_2] : memref<128x64xbf16, #tpu.memory_space<vmem>>, vector<128x64xbf16>
    %cst = arith.constant dense<0.000000e+00> : vector<512x64xf32>
    %2 = tpu.matmul %0, %1, %cst {dimension_numbers = #tpu.dot_dimension_numbers<[1], [0], [0], [1], [0, 0, 1, 1], [], []>} : vector<512x128xbf16>, vector<128x64xbf16>, vector<512x64xf32> -> vector<512x64xf32>
    %c0_3 = arith.constant 0 : index
    %c0_4 = arith.constant 0 : index
    %3 = vector.load %arg4[%c0_3, %c0_4] : memref<1x64xf32, #tpu.memory_space<vmem>>, vector<1x64xf32>
    %4 = vector.broadcast %3 : vector<1x64xf32> to vector<512x64xf32>
    %5 = arith.mulf %2, %4 : vector<512x64xf32>
    %c0_5 = arith.constant 0 : index
    %c0_6 = arith.constant 0 : index
    %6 = vector.load %arg5[%c0_5, %c0_6] : memref<1x64xf32, #tpu.memory_space<vmem>>, vector<1x64xf32>
    %7 = vector.broadcast %6 : vector<1x64xf32> to vector<512x64xf32>
    %8 = arith.addf %5, %7 : vector<512x64xf32>
    %cst_7 = arith.constant 0.000000e+00 : f32
    %9 = vector.broadcast %cst_7 : f32 to vector<512x64xf32>
    %10 = arith.maximumf %8, %9 : vector<512x64xf32>
    %11 = arith.truncf %10 : vector<512x64xf32> to vector<512x64xbf16>
    %c0_8 = arith.constant 0 : index
    %c0_9 = arith.constant 0 : index
    %12 = vector.load %arg6[%c0_8, %c0_9] : memref<512x64xbf16, #tpu.memory_space<vmem>>, vector<512x64xbf16>
    tpu.vector_store %arg6[%c0_8, %c0_9], %11 {strides = array<i32>} : memref<512x64xbf16, #tpu.memory_space<vmem>>, vector<512x64xbf16>,
    return
  }
  func.func @transform_0(%arg0: i32, %arg1: i32) -> (i32, i32) {
    %c0_i32 = arith.constant 0 : i32
    %c0_i32_0 = arith.constant 0 : i32
    return %arg0, %c0_i32 : i32, i32
  }
  func.func @transform_1(%arg0: i32, %arg1: i32) -> (i32, i32) {
    %c0_i32 = arith.constant 0 : i32
    %c0_i32_0 = arith.constant 0 : i32
    return %c0_i32, %arg1 : i32, i32
  }
  func.func @transform_2(%arg0: i32, %arg1: i32) -> (i32, i32) {
    %c0_i32 = arith.constant 0 : i32
    %c0_i32_0 = arith.constant 0 : i32
    return %c0_i32, %arg1 : i32, i32
  }
  func.func @transform_3(%arg0: i32, %arg1: i32) -> (i32, i32) {
    %c0_i32 = arith.constant 0 : i32
    %c0_i32_0 = arith.constant 0 : i32
    return %c0_i32, %arg1 : i32, i32
  }
  func.func @transform_4(%arg0: i32, %arg1: i32) -> (i32, i32) {
    %c0_i32 = arith.constant 0 : i32
    return %arg0, %arg1 : i32, i32
  }
}

</mosaic_0001>

<bundles_post_ra>
// kernel: fused_matmul_affine_act.1
= control target key start
LH: loop header
LB: loop body
LE: loop exit
PB: predicated region body
PF: predicated region fallthrough
CT: control target
= control target key end

     0   :  { %9 = vsyncpa [#allocation3], 0  ;;  %s2496_s0 = inlined_call_operand.hbm [shape: bf16[1024,128], index: 0, kind: input, shape index: {}]   ;;  %s2497_s1 = inlined_call_operand.vmem [shape: bf16[128,64], index: 1, kind: input, shape index: {}]   ;;  %s2498_s2 = inlined_call_operand.vmem [shape: f32[1,64], index: 2, kind: input, shape index: {}]   ;;  %s2499_s3 = inlined_call_operand.vmem [shape: f32[1,64], index: 3, kind: input, shape index: {}]   ;;  %s2500_s4 = inlined_call_operand.vmem [shape: bf16[1024,64], index: 4, kind: output, shape index: {}]  }
   0x1   :  { %11 = vsyncpa [#allocation3 + $0x1], 0  ;;  %s2075_s15 = smov 0   ;;  %s2077_s16 = smov 0  }
   0x2   :  { %s2079_s17 = smov 0   ;;  %s2081_s18 = smov 0  }
   0x3   :  { %s2083_s19 = smov 0   ;;  %s2085_s20 = smov 0  }
   0x4 LB: > { %s1547_s21 = sadd.s32 4294967295, %s2045_s20   ;;  %s29_s22 = sadd.s32 1, %s2041_s19  ;;  %s2045_s20 = sphi %s2085_s20, %s17_s20   ;;  %s2041_s19 = sphi %s2083_s19, %s2508_s19   ;;  %s2037_s18 = sphi %s2081_s18, %s2507_s18   ;;  %s2033_s17 = sphi %s2079_s17, %s2506_s17   ;;  %s2029_s16 = sphi %s2077_s16, %s2505_s16   ;;  %s2025_s15 = sphi %s2075_s15, %s2504_s15  }
   0x5   : > { %p31_p0 = scmp.ge.s32.totalorder %s29_s22, 2  ;;  %s36_s23 = sadd.s32 1, %s2033_s17 }
   0x6   : > { %p43_p1 = scmp.ne.s32.totalorder %s2033_s17, %s2029_s16  ;;  %p44_p2 = scmp.eq.s32.totalorder %s2045_s20, 0 }
   0x7   : > { %s2510_s22 = smov (%p31_p0, %s29_s22), 0  ;;  %p49_p4 = scmp.ne.s32.totalorder %s2029_s16, %s2025_s15 }
   0x8   : > { %p2111_p3 = por %p44_p2, %p43_p1  ;;  %s33_s25 = ssub.s32 %s2041_s19, %s2510_s22 }
   0x9   : > { %p50_p5 = scmp.eq.s32.totalorder %s1547_s21, 0  ;;  %p34_p6 = scmp.eq.s32.totalorder %s33_s25, 0 }
   0xa   : > { %p1876_p8 = scmp.lt.s32.totalorder %s2045_s20, 2  ;;  %s198_s28 = sand.u32 1, %s2033_s17  }
   0xb   : > { %p2118_p7 = por %p50_p5, %p49_p4  ;;  %s1669_s29 = sshll.u32 %s2041_s19, 12 }
   0xc   : > { %s2124_s27 = scalar_select %p34_p6, %s2033_s17, %s36_s23  }
   0xd   : > { %s1554_s30 = sshll.u32 %s198_s28, 8  ;;  %s208_s7 = scalar_lea.hbm %s2496_s0, %s1669_s29 }
   0xe   : > { %s202_s8 = scalar_lea.vmem [#allocation2], %s1554_s30  ;;  %p2133_p9 = pnand %p1876_p8, %p2111_p3 }
   0xf   : > { %s209_s9 = sshll.u32 %s202_s8, 4  ;;  %s199_s11 = scalar_lea.sflag [#allocation3], %s198_s28  ;;  %s210_s9 = int_to_ptr.vmem [resolvable:$true] %s209_s9 }
  0x10   : > { %p1969_p10 = pneg %p2133_p9  ;;  %s1980_s12 = scalar_lea.vmem %s210_s9, 4096 }
  0x11   : > { %p1981_p11 = scmp.ne.s32.totalorder %s210_s9, %s1980_s12  ;;  %s2047_s13 = smov [#allocation2]  }
  0x12   : > { %s1985_s14 = sshll.u32 %s2047_s13, 4  ;;  %s1986_s14 = int_to_ptr.vmem [resolvable:$false] %s1985_s14 }
  0x13   : > { %p1983_p12 = pnand %p1981_p11, %p1969_p10  ;;  %s1987_s15 = scalar_lea.vmem %s1986_s14, 8192 }
  0x14   : > { %p1988_p0 = scmp.lt.s32.totalorder %s210_s9, %s1986_s14  ;;  %p1989_p1 = scmp.lt.s32.totalorder %s1987_s15, %s1980_s12 }
  0x15   : > { %p1984_p13 = pneg %p1983_p12 }
  0x16   : > { %p1990_p2 = por %p1989_p1, %p1988_p0 }
  0x18   : > { %p1991_p3 = pnand %p1990_p2, %p1984_p13 }
  0x1a   : > { %1994 = shalt.err (!%p1991_p3)
}
  0x1b   : > { %s2048_s21 = smov 64   ;;  %s2049_s23 = smov 4  }
  0x1c   : > { %1875 = dma.hbm_to_vmem [thread:$0]  (!%p2133_p9), %s208_s7, 4096, %s210_s9, %s199_s11, %s2048_s21, %s2048_s21, %s2049_s23  }
  0x1d   : > { %p1557_p4 = scmp.ge.s32.totalorder %s2045_s20, 1  ;;  %p217_p5 = scmp.lt.s32.totalorder %s2045_s20, 3 }
  0x1f   : > { %p218_p6 = pnand %p1557_p4, %p217_p5 }
  0x20   : > { %s223_s24 = sand.u32 (!%p218_p6), 1, %s2029_s16  }
  0x21   : > { %221 = sbr.rel (%p218_p6) target bundleno = 341 (0x155), region = 36  ;;  %s1558_s25 = sshll.u32 (!%p218_p6), %s223_s24, 8 }
  0x22   : > { %s224_s28 = scalar_lea.sflag (!%p218_p6), [#allocation3], %s223_s24  ;;  %s2144_s29 = scalar_lea.vmem (!%p218_p6), [#allocation2], %s1558_s25 }
  0x26   : > { %2020 = dma.done.wait (%p2118_p7), %s224_s28, 4096  }
  0x27   : > { %2022 = vsyncadd (%p2118_p7), %s224_s28, 4294963200  ;;  %v1927_v0 = vld [vmem:[%s2497_s1 + $0x38] sm:$0xff]   ;;  %v1928_v1 = vld [vmem:[%s2497_s1 + $0x30] sm:$0xff]   ;;  %s1559_s25 = sshll.u32 %s2037_s18, 6  ;;  %vm1357_vm0 = vcmask 519168  }
  0x28   : > { %1774 = vmatprep.subr.bf16.mxu0 %v1927_v0  ;;  %1854 = vmatprep.subr.bf16.mxu1 %v1927_v0  ;;  %v1929_v2 = vld [vmem:[%s2497_s1 + $0x28] sm:$0xff]   ;;  %v1930_v3 = vld [vmem:[%s2497_s1 + $0x20] sm:$0xff]   ;;  %v1931_v6 = vld [vmem:[%s2497_s1 + $0x18] sm:$0xff]   ;;  %p277_p7 = scmp.lt.s32.totalorder %s1559_s25, 127 }
  0x29   : > { %1775 = vmatpush3.bf16.msra.mxu0 %v1927_v0  ;;  %1862 = vmatpush3.bf16.msra.mxu1 %v1927_v0  ;;  %v1935_v4 = vld [vmem:[%s2144_s29] sm:$0xff]   ;;  %v1932_v7 = vld [vmem:[%s2497_s1 + $0x10] sm:$0xff]   ;;  %v1933_v8 = vld [vmem:[%s2497_s1 + $0x8] sm:$0xff]  }
  0x2a   : > { %1776 = vmatprep.subr.bf16.mxu0 %v1928_v1  ;;  %1855 = vmatprep.subr.bf16.mxu1 %v1928_v1  ;;  %v1936_v5 = vld [vmem:[%s2144_s29 + $0x80] sm:$0xff]   ;;  %v1937_v10 = vld [vmem:[%s2144_s29 + $0x8] sm:$0xff]   ;;  %v1939_v12 = vld [vmem:[%s2144_s29 + $0x10] sm:$0xff]   ;;  %s2512_s25 = smov (!%p277_p7, %s1559_s25), 127 }
  0x2b   : > { %1790 = vmatprep.mubr.bf16.mxu0 %v1935_v4  ;;  %1822 = vmatprep.mubr.bf16.mxu1 %v1936_v5  ;;  %v1934_v9 = vld [vmem:[%s2497_s1] sm:$0xff]   ;;  %v1938_v11 = vld [vmem:[%s2144_s29 + $0x88] sm:$0xff]   ;;  %v1940_v13 = vld [vmem:[%s2144_s29 + $0x90] sm:$0xff]   ;;  %s1560_s18 = sshll.u32 %s2512_s25, 2 }
  0x2c   : > { %v1941_v14 = vld [vmem:[%s2144_s29 + $0x18] sm:$0xff]   ;;  %v1943_v16 = vld [vmem:[%s2144_s29 + $0x20] sm:$0xff]   ;;  %v1945_v18 = vld [vmem:[%s2144_s29 + $0x28] sm:$0xff]   ;;  %s2228_s8 = scalar_lea.vmem %s2500_s4, %s1560_s18 }
  0x2d   : > { %1777 = vmatpush3.bf16.msra.mxu0 %v1928_v1  ;;  %1863 = vmatpush3.bf16.msra.mxu1 %v1928_v1  ;;  %v1942_v15 = vld [vmem:[%s2144_s29 + $0x98] sm:$0xff]   ;;  %v1944_v17 = vld [vmem:[%s2144_s29 + $0xa0] sm:$0xff]   ;;  %v1946_v19 = vld [vmem:[%s2144_s29 + $0xa8] sm:$0xff]  }
  0x2e   : > { %1778 = vmatprep.subr.bf16.mxu0 %v1929_v2  ;;  %1856 = vmatprep.subr.bf16.mxu1 %v1929_v2  ;;  %v1947_v20 = vld [vmem:[%s2144_s29 + $0x30] sm:$0xff]   ;;  %v1949_v22 = vld [vmem:[%s2144_s29 + $0x38] sm:$0xff]   ;;  %v1951_v24 = vld [vmem:[%s2144_s29 + $0x40] sm:$0xff]  }
  0x2f   : > { %v1948_v21 = vld [vmem:[%s2144_s29 + $0xb0] sm:$0xff]   ;;  %v1950_v23 = vld [vmem:[%s2144_s29 + $0xb8] sm:$0xff]   ;;  %v1952_v25 = vld [vmem:[%s2144_s29 + $0xc0] sm:$0xff]  }
  0x30   : > { %v1953_v26 = vld [vmem:[%s2144_s29 + $0x48] sm:$0xff]   ;;  %v1955_v28 = vld [vmem:[%s2144_s29 + $0x50] sm:$0xff]   ;;  %v1957_v30 = vld [vmem:[%s2144_s29 + $0x58] sm:$0xff]  }
  0x31   : > { %1779 = vmatpush3.bf16.msra.mxu0 %v1929_v2  ;;  %1864 = vmatpush3.bf16.msra.mxu1 %v1929_v2  ;;  %v1954_v27 = vld [vmem:[%s2144_s29 + $0xc8] sm:$0xff]   ;;  %v1956_v29 = vld [vmem:[%s2144_s29 + $0xd0] sm:$0xff]   ;;  %v1958_v31 = vld [vmem:[%s2144_s29 + $0xd8] sm:$0xff]  }
  0x32   : > { %1780 = vmatprep.subr.bf16.mxu0 %v1930_v3  ;;  %1857 = vmatprep.subr.bf16.mxu1 %v1930_v3  ;;  %v1959_v32 = vld [vmem:[%s2144_s29 + $0x60] sm:$0xff]   ;;  %v1961_v34 = vld [vmem:[%s2144_s29 + $0x68] sm:$0xff]   ;;  %v1963_v36 = vld [vmem:[%s2144_s29 + $0x70] sm:$0xff]  }
  0x33   : > { %v1960_v33 = vld [vmem:[%s2144_s29 + $0xe0] sm:$0xff]   ;;  %v1962_v35 = vld [vmem:[%s2144_s29 + $0xe8] sm:$0xff]   ;;  %v1964_v37 = vld [vmem:[%s2144_s29 + $0xf0] sm:$0xff]  }
  0x34   : > { %v1965_v38 = vld [vmem:[%s2144_s29 + $0x78] sm:$0xff]   ;;  %v2210_v40 = vld [vmem:[%s2498_s2] ss:$0 sm:$0xff] }
  0x35   : > { %1781 = vmatpush3.bf16.msra.mxu0 %v1930_v3  ;;  %1865 = vmatpush3.bf16.msra.mxu1 %v1930_v3  ;;  %v1966_v39 = vld [vmem:[%s2144_s29 + $0xf8] sm:$0xff]   ;;  %v2215_v42 = vld [vmem:[%s2499_s3] ss:$0 sm:$0xff] }
  0x36   : > { %1782 = vmatprep.subr.bf16.mxu0 %v1931_v6  ;;  %1858 = vmatprep.subr.bf16.mxu1 %v1931_v6 }
  0x39   : > { %1783 = vmatpush3.bf16.msra.mxu0 %v1931_v6  ;;  %1866 = vmatpush3.bf16.msra.mxu1 %v1931_v6 }
  0x3a   : > { %1784 = vmatprep.subr.bf16.mxu0 %v1932_v7  ;;  %1859 = vmatprep.subr.bf16.mxu1 %v1932_v7 }
  0x3d   : > { %1785 = vmatpush3.bf16.msra.mxu0 %v1932_v7  ;;  %1867 = vmatpush3.bf16.msra.mxu1 %v1932_v7 }
  0x3e   : > { %1786 = vmatprep.subr.bf16.mxu0 %v1933_v8  ;;  %1860 = vmatprep.subr.bf16.mxu1 %v1933_v8 }
  0x41   : > { %1787 = vmatpush3.bf16.msra.mxu0 %v1933_v8  ;;  %1868 = vmatpush3.bf16.msra.mxu1 %v1933_v8 }
  0x42   : > { %1788 = vmatprep.subr.bf16.mxu0 %v1934_v9  ;;  %1861 = vmatprep.subr.bf16.mxu1 %v1934_v9 }
  0x45   : > { %1789 = vmatpush3.bf16.msra.mxu0 %v1934_v9  ;;  %1869 = vmatpush3.bf16.msra.mxu1 %v1934_v9 }
  0x48   : > { %1791 = vmatmul.mubr.bf16.vlgmr.msra.gmra.mxu0 %v1937_v10  ;;  %1823 = vmatmul.mubr.bf16.vlgmr.msra.gmra.mxu1 %v1938_v11 }
  0x49   : > { %1794 = vmatprep.mubr.bf16.mxu0 %v1939_v12  ;;  %1826 = vmatprep.mubr.bf16.mxu1 %v1940_v13 }
  0x50   : > { %1795 = vmatmul.mubr.bf16.gmra.mxu0 %v1941_v14  ;;  %1827 = vmatmul.mubr.bf16.gmra.mxu1 %v1942_v15 }
  0x51   : > { %1798 = vmatprep.mubr.bf16.mxu0 %v1943_v16  ;;  %1830 = vmatprep.mubr.bf16.mxu1 %v1944_v17 }
  0x58   : > { %1799 = vmatmul.mubr.bf16.gmra.mxu0 %v1945_v18  ;;  %1831 = vmatmul.mubr.bf16.gmra.mxu1 %v1946_v19 }
  0x59   : > { %1802 = vmatprep.mubr.bf16.mxu0 %v1947_v20  ;;  %1834 = vmatprep.mubr.bf16.mxu1 %v1948_v21 }
  0x60   : > { %1803 = vmatmul.mubr.bf16.gmra.mxu0 %v1949_v22  ;;  %1835 = vmatmul.mubr.bf16.gmra.mxu1 %v1950_v23 }
  0x61   : > { %1806 = vmatprep.mubr.bf16.mxu0 %v1951_v24  ;;  %1838 = vmatprep.mubr.bf16.mxu1 %v1952_v25 }
  0x68   : > { %1807 = vmatmul.mubr.bf16.gmra.mxu0 %v1953_v26  ;;  %1839 = vmatmul.mubr.bf16.gmra.mxu1 %v1954_v27 }
  0x69   : > { %1810 = vmatprep.mubr.bf16.mxu0 %v1955_v28  ;;  %1842 = vmatprep.mubr.bf16.mxu1 %v1956_v29 }
  0x70   : > { %1811 = vmatmul.mubr.bf16.gmra.mxu0 %v1957_v30  ;;  %1843 = vmatmul.mubr.bf16.gmra.mxu1 %v1958_v31 }
  0x71   : > { %1814 = vmatprep.mubr.bf16.mxu0 %v1959_v32  ;;  %1846 = vmatprep.mubr.bf16.mxu1 %v1960_v33 }
  0x78   : > { %1815 = vmatmul.mubr.bf16.gmra.mxu0 %v1961_v34  ;;  %1847 = vmatmul.mubr.bf16.gmra.mxu1 %v1962_v35 }
  0x79   : > { %1818 = vmatprep.mubr.bf16.mxu0 %v1963_v36  ;;  %1850 = vmatprep.mubr.bf16.mxu1 %v1964_v37 }
  0x80   : > { %1819 = vmatmul.mubr.bf16.gmra.mxu0 %v1965_v38  ;;  %1851 = vmatmul.mubr.bf16.gmra.mxu1 %v1966_v39 }
 0x108   : > { %v1792_v41 = vpop.f32.mrf.mxu0  ;;  %v1824_v43 = vpop.f32.mrf.mxu1 }
 0x109   : > { %v904_v44 = vmul.f32 %v1792_v41, %v2210_v40  ;;  %v936_v45 = vmul.f32 %v1824_v43, %v2210_v40 }
 0x10a   : > { %v640_v46 = vpop.f32.mrf.mxu0  ;;  %v768_v47 = vpop.f32.mrf.mxu1 }
 0x10b   : > { %v975_v48 = vadd.f32 %v2215_v42, %v904_v44  ;;  %v1007_v49 = vadd.f32 %v2215_v42, %v936_v45  ;;  %v902_v50 = vmul.f32 %v2210_v40, %v640_v46  ;;  %v934_v51 = vmul.f32 %v2210_v40, %v768_v47 }
 0x10c   : > { %v1793_v52 = vpop.f32.mrf.mxu0  ;;  %v1825_v53 = vpop.f32.mrf.mxu1 }
 0x10d   : > { %v1039_v54 = vmax.f32 %v975_v48, 0.0  ;;  %v1071_v55 = vmax.f32 %v1007_v49, 0.0  ;;  %v973_v56 = vadd.f32 %v2215_v42, %v902_v50  ;;  %v1005_v57 = vadd.f32 %v2215_v42, %v934_v51 }
 0x10e   : > { %v905_v58 = vmul.f32 %v1793_v52, %v2210_v40  ;;  %v937_v59 = vmul.f32 %v1825_v53, %v2210_v40  ;;  %v643_v60 = vpop.f32.mrf.mxu0  ;;  %v771_v61 = vpop.f32.mrf.mxu1 }
 0x10f   : > { %v1672_v62 = vpack.c.bf16 %v1039_v54, %v1039_v54  ;;  %v1704_v63 = vpack.c.bf16 %v1071_v55, %v1071_v55  ;;  %v1037_v0 = vmax.f32 %v973_v56, 0.0  ;;  %v1069_v1 = vmax.f32 %v1005_v57, 0.0 }
 0x110   : > { %v976_v2 = vadd.f32 %v2215_v42, %v905_v58  ;;  %v1008_v3 = vadd.f32 %v2215_v42, %v937_v59  ;;  %v903_v4 = vmul.f32 %v2210_v40, %v643_v60  ;;  %v935_v5 = vmul.f32 %v2210_v40, %v771_v61  ;;  %v1796_v6 = vpop.f32.mrf.mxu0  ;;  %v1828_v7 = vpop.f32.mrf.mxu1 }
 0x111   : > { %1360 = vst.msk [vmem:[%s2228_s8 + $0x8] sm:$0xf] %vm1357_vm0, %v1672_v62  ;;  %1392 = vst.msk [vmem:[%s2228_s8 + $0x88] sm:$0xf] %vm1357_vm0, %v1704_v63  ;;  %v1670_v8 = vpack.c.bf16 %v1037_v0, %v1037_v0  ;;  %v1702_v9 = vpack.c.bf16 %v1069_v1, %v1069_v1  ;;  %v908_v10 = vmul.f32 %v1796_v6, %v2210_v40 }
 0x112   : > { %v940_v11 = vmul.f32 %v1828_v7, %v2210_v40  ;;  %v1040_v12 = vmax.f32 %v976_v2, 0.0  ;;  %v1072_v13 = vmax.f32 %v1008_v3, 0.0  ;;  %v974_v14 = vadd.f32 %v2215_v42, %v903_v4  ;;  %v656_v16 = vpop.f32.mrf.mxu0  ;;  %v784_v17 = vpop.f32.mrf.mxu1 }
 0x113   : > { %v1006_v15 = vadd.f32 %v2215_v42, %v935_v5  ;;  %1358 = vst.msk [vmem:[%s2228_s8] sm:$0xf] %vm1357_vm0, %v1670_v8  ;;  %1390 = vst.msk [vmem:[%s2228_s8 + $0x80] sm:$0xf] %vm1357_vm0, %v1702_v9  ;;  %v979_v18 = vadd.f32 %v2215_v42, %v908_v10  ;;  %v906_v20 = vmul.f32 %v2210_v40, %v656_v16 }
 0x114   : > { %v1011_v19 = vadd.f32 %v2215_v42, %v940_v11  ;;  %v938_v21 = vmul.f32 %v2210_v40, %v784_v17  ;;  %v1673_v22 = vpack.c.bf16 %v1040_v12, %v1040_v12  ;;  %v1705_v23 = vpack.c.bf16 %v1072_v13, %v1072_v13  ;;  %v1797_v26 = vpop.f32.mrf.mxu0  ;;  %v1829_v27 = vpop.f32.mrf.mxu1 }
 0x115   : > { %v1038_v24 = vmax.f32 %v974_v14, 0.0  ;;  %v1070_v25 = vmax.f32 %v1006_v15, 0.0  ;;  %v1043_v28 = vmax.f32 %v979_v18, 0.0  ;;  %v977_v30 = vadd.f32 %v2215_v42, %v906_v20 }
 0x116   : > { %v1075_v29 = vmax.f32 %v1011_v19, 0.0  ;;  %v1009_v31 = vadd.f32 %v2215_v42, %v938_v21  ;;  %1361 = vst.msk [vmem:[%s2228_s8 + $0xc] sm:$0xf] %vm1357_vm0, %v1673_v22  ;;  %1393 = vst.msk [vmem:[%s2228_s8 + $0x8c] sm:$0xf] %vm1357_vm0, %v1705_v23  ;;  %v909_v34 = vmul.f32 %v1797_v26, %v2210_v40  ;;  %v941_v35 = vmul.f32 %v1829_v27, %v2210_v40  ;;  %v659_v36 = vpop.f32.mrf.mxu0  ;;  %v787_v37 = vpop.f32.mrf.mxu1 }
 0x117   : > { %v1671_v32 = vpack.c.bf16 %v1038_v24, %v1038_v24  ;;  %v1703_v33 = vpack.c.bf16 %v1070_v25, %v1070_v25  ;;  %v1676_v38 = vpack.c.bf16 %v1043_v28, %v1043_v28  ;;  %v1041_v41 = vmax.f32 %v977_v30, 0.0 }
 0x118   : > { %v1708_v39 = vpack.c.bf16 %v1075_v29, %v1075_v29  ;;  %v1073_v43 = vmax.f32 %v1009_v31, 0.0  ;;  %v980_v44 = vadd.f32 %v2215_v42, %v909_v34  ;;  %v1012_v45 = vadd.f32 %v2215_v42, %v941_v35  ;;  %v1800_v48 = vpop.f32.mrf.mxu0  ;;  %v1832_v49 = vpop.f32.mrf.mxu1 }
 0x119   : > { %1359 = vst.msk [vmem:[%s2228_s8 + $0x4] sm:$0xf] %vm1357_vm0, %v1671_v32  ;;  %1391 = vst.msk [vmem:[%s2228_s8 + $0x84] sm:$0xf] %vm1357_vm0, %v1703_v33  ;;  %v907_v46 = vmul.f32 %v2210_v40, %v659_v36  ;;  %v939_v47 = vmul.f32 %v2210_v40, %v787_v37  ;;  %v1674_v50 = vpack.c.bf16 %v1041_v41, %v1041_v41 }
 0x11a   : > { %1364 = vst.msk [vmem:[%s2228_s8 + $0x18] sm:$0xf] %vm1357_vm0, %v1676_v38  ;;  %1396 = vst.msk [vmem:[%s2228_s8 + $0x98] sm:$0xf] %vm1357_vm0, %v1708_v39  ;;  %v1706_v51 = vpack.c.bf16 %v1073_v43, %v1073_v43  ;;  %v912_v52 = vmul.f32 %v1800_v48, %v2210_v40  ;;  %v944_v53 = vmul.f32 %v1832_v49, %v2210_v40  ;;  %v1044_v54 = vmax.f32 %v980_v44, 0.0  ;;  %v672_v58 = vpop.f32.mrf.mxu0  ;;  %v800_v59 = vpop.f32.mrf.mxu1 }
 0x11b   : > { %v1076_v55 = vmax.f32 %v1012_v45, 0.0  ;;  %v978_v56 = vadd.f32 %v2215_v42, %v907_v46  ;;  %v1010_v57 = vadd.f32 %v2215_v42, %v939_v47  ;;  %1362 = vst.msk [vmem:[%s2228_s8 + $0x10] sm:$0xf] %vm1357_vm0, %v1674_v50  ;;  %v910_v62 = vmul.f32 %v2210_v40, %v672_v58 }
 0x11c   : > { %1394 = vst.msk [vmem:[%s2228_s8 + $0x90] sm:$0xf] %vm1357_vm0, %v1706_v51  ;;  %v983_v60 = vadd.f32 %v2215_v42, %v912_v52  ;;  %v1015_v61 = vadd.f32 %v2215_v42, %v944_v53  ;;  %v942_v63 = vmul.f32 %v2210_v40, %v800_v59  ;;  %v1677_v0 = vpack.c.bf16 %v1044_v54, %v1044_v54  ;;  %v1801_v4 = vpop.f32.mrf.mxu0  ;;  %v1833_v5 = vpop.f32.mrf.mxu1 }
 0x11d   : > { %v1709_v1 = vpack.c.bf16 %v1076_v55, %v1076_v55  ;;  %v1042_v2 = vmax.f32 %v978_v56, 0.0  ;;  %v1074_v3 = vmax.f32 %v1010_v57, 0.0  ;;  %v981_v8 = vadd.f32 %v2215_v42, %v910_v62 }
 0x11e   : > { %v1047_v6 = vmax.f32 %v983_v60, 0.0  ;;  %v1079_v7 = vmax.f32 %v1015_v61, 0.0  ;;  %v1013_v9 = vadd.f32 %v2215_v42, %v942_v63  ;;  %1365 = vst.msk [vmem:[%s2228_s8 + $0x1c] sm:$0xf] %vm1357_vm0, %v1677_v0  ;;  %v913_v12 = vmul.f32 %v1801_v4, %v2210_v40  ;;  %v675_v14 = vpop.f32.mrf.mxu0  ;;  %v803_v15 = vpop.f32.mrf.mxu1 }
 0x11f   : > { %1397 = vst.msk [vmem:[%s2228_s8 + $0x9c] sm:$0xf] %vm1357_vm0, %v1709_v1  ;;  %v1675_v10 = vpack.c.bf16 %v1042_v2, %v1042_v2  ;;  %v1707_v11 = vpack.c.bf16 %v1074_v3, %v1074_v3  ;;  %v945_v13 = vmul.f32 %v1833_v5, %v2210_v40  ;;  %v1045_v18 = vmax.f32 %v981_v8, 0.0 }
 0x120   : > { %v1680_v16 = vpack.c.bf16 %v1047_v6, %v1047_v6  ;;  %v1712_v17 = vpack.c.bf16 %v1079_v7, %v1079_v7  ;;  %v1077_v19 = vmax.f32 %v1013_v9, 0.0  ;;  %v984_v20 = vadd.f32 %v2215_v42, %v913_v12  ;;  %v1804_v24 = vpop.f32.mrf.mxu0  ;;  %v1836_v25 = vpop.f32.mrf.mxu1 }
 0x121   : > { %1363 = vst.msk [vmem:[%s2228_s8 + $0x14] sm:$0xf] %vm1357_vm0, %v1675_v10  ;;  %1395 = vst.msk [vmem:[%s2228_s8 + $0x94] sm:$0xf] %vm1357_vm0, %v1707_v11  ;;  %v1016_v21 = vadd.f32 %v2215_v42, %v945_v13  ;;  %v911_v22 = vmul.f32 %v2210_v40, %v675_v14  ;;  %v943_v23 = vmul.f32 %v2210_v40, %v803_v15 }
 0x122   : > { %1368 = vst.msk [vmem:[%s2228_s8 + $0x28] sm:$0xf] %vm1357_vm0, %v1680_v16  ;;  %1400 = vst.msk [vmem:[%s2228_s8 + $0xa8] sm:$0xf] %vm1357_vm0, %v1712_v17  ;;  %v1678_v26 = vpack.c.bf16 %v1045_v18, %v1045_v18  ;;  %v1710_v27 = vpack.c.bf16 %v1077_v19, %v1077_v19  ;;  %v916_v28 = vmul.f32 %v1804_v24, %v2210_v40  ;;  %v1048_v30 = vmax.f32 %v984_v20, 0.0  ;;  %v688_v34 = vpop.f32.mrf.mxu0  ;;  %v816_v35 = vpop.f32.mrf.mxu1 }
 0x123   : > { %v948_v29 = vmul.f32 %v1836_v25, %v2210_v40  ;;  %v1080_v31 = vmax.f32 %v1016_v21, 0.0  ;;  %v982_v32 = vadd.f32 %v2215_v42, %v911_v22  ;;  %v1014_v33 = vadd.f32 %v2215_v42, %v943_v23 }
 0x124   : > { %1366 = vst.msk [vmem:[%s2228_s8 + $0x20] sm:$0xf] %vm1357_vm0, %v1678_v26  ;;  %1398 = vst.msk [vmem:[%s2228_s8 + $0xa0] sm:$0xf] %vm1357_vm0, %v1710_v27  ;;  %v987_v36 = vadd.f32 %v2215_v42, %v916_v28  ;;  %v914_v38 = vmul.f32 %v2210_v40, %v688_v34  ;;  %v946_v39 = vmul.f32 %v2210_v40, %v816_v35  ;;  %v1805_v46 = vpop.f32.mrf.mxu0  ;;  %v1837_v47 = vpop.f32.mrf.mxu1 }
 0x125   : > { %v1019_v37 = vadd.f32 %v2215_v42, %v948_v29  ;;  %v1681_v41 = vpack.c.bf16 %v1048_v30, %v1048_v30  ;;  %v1713_v43 = vpack.c.bf16 %v1080_v31, %v1080_v31  ;;  %v1046_v44 = vmax.f32 %v982_v32, 0.0 }
 0x126   : > { %v1078_v45 = vmax.f32 %v1014_v33, 0.0  ;;  %v1051_v48 = vmax.f32 %v987_v36, 0.0  ;;  %v985_v50 = vadd.f32 %v2215_v42, %v914_v38  ;;  %v1017_v51 = vadd.f32 %v2215_v42, %v946_v39  ;;  %v691_v56 = vpop.f32.mrf.mxu0  ;;  %v819_v57 = vpop.f32.mrf.mxu1 }
 0x127   : > { %v1083_v49 = vmax.f32 %v1019_v37, 0.0  ;;  %1369 = vst.msk [vmem:[%s2228_s8 + $0x2c] sm:$0xf] %vm1357_vm0, %v1681_v41  ;;  %1401 = vst.msk [vmem:[%s2228_s8 + $0xac] sm:$0xf] %vm1357_vm0, %v1713_v43  ;;  %v1679_v52 = vpack.c.bf16 %v1046_v44, %v1046_v44  ;;  %v917_v54 = vmul.f32 %v1805_v46, %v2210_v40  ;;  %v949_v55 = vmul.f32 %v1837_v47, %v2210_v40 }
 0x128   : > { %v1711_v53 = vpack.c.bf16 %v1078_v45, %v1078_v45  ;;  %v1684_v58 = vpack.c.bf16 %v1051_v48, %v1051_v48  ;;  %v1049_v60 = vmax.f32 %v985_v50, 0.0  ;;  %v1081_v61 = vmax.f32 %v1017_v51, 0.0  ;;  %v1808_v2 = vpop.f32.mrf.mxu0  ;;  %v1840_v3 = vpop.f32.mrf.mxu1 }
 0x129   : > { %v1716_v59 = vpack.c.bf16 %v1083_v49, %v1083_v49  ;;  %1367 = vst.msk [vmem:[%s2228_s8 + $0x24] sm:$0xf] %vm1357_vm0, %v1679_v52  ;;  %v988_v62 = vadd.f32 %v2215_v42, %v917_v54  ;;  %v1020_v63 = vadd.f32 %v2215_v42, %v949_v55  ;;  %v915_v0 = vmul.f32 %v2210_v40, %v691_v56 }
 0x12a   : > { %1399 = vst.msk [vmem:[%s2228_s8 + $0xa4] sm:$0xf] %vm1357_vm0, %v1711_v53  ;;  %v947_v1 = vmul.f32 %v2210_v40, %v819_v57  ;;  %1372 = vst.msk [vmem:[%s2228_s8 + $0x38] sm:$0xf] %vm1357_vm0, %v1684_v58  ;;  %v1682_v4 = vpack.c.bf16 %v1049_v60, %v1049_v60  ;;  %v1714_v5 = vpack.c.bf16 %v1081_v61, %v1081_v61  ;;  %v704_v12 = vpop.f32.mrf.mxu0  ;;  %v832_v13 = vpop.f32.mrf.mxu1 }
 0x12b   : > { %1404 = vst.msk [vmem:[%s2228_s8 + $0xb8] sm:$0xf] %vm1357_vm0, %v1716_v59  ;;  %v920_v6 = vmul.f32 %v1808_v2, %v2210_v40  ;;  %v952_v7 = vmul.f32 %v1840_v3, %v2210_v40  ;;  %v1052_v8 = vmax.f32 %v988_v62, 0.0  ;;  %v1084_v9 = vmax.f32 %v1020_v63, 0.0 }
 0x12c   : > { %v986_v10 = vadd.f32 %v2215_v42, %v915_v0  ;;  %v1018_v11 = vadd.f32 %v2215_v42, %v947_v1  ;;  %1370 = vst.msk [vmem:[%s2228_s8 + $0x30] sm:$0xf] %vm1357_vm0, %v1682_v4  ;;  %1402 = vst.msk [vmem:[%s2228_s8 + $0xb0] sm:$0xf] %vm1357_vm0, %v1714_v5  ;;  %v918_v16 = vmul.f32 %v2210_v40, %v704_v12  ;;  %v1809_v22 = vpop.f32.mrf.mxu0  ;;  %v1841_v23 = vpop.f32.mrf.mxu1 }
 0x12d   : > { %v991_v14 = vadd.f32 %v2215_v42, %v920_v6  ;;  %v1023_v15 = vadd.f32 %v2215_v42, %v952_v7  ;;  %v950_v17 = vmul.f32 %v2210_v40, %v832_v13  ;;  %v1685_v18 = vpack.c.bf16 %v1052_v8, %v1052_v8 }
 0x12e   : > { %v1717_v19 = vpack.c.bf16 %v1084_v9, %v1084_v9  ;;  %v1050_v20 = vmax.f32 %v986_v10, 0.0  ;;  %v1082_v21 = vmax.f32 %v1018_v11, 0.0  ;;  %v989_v26 = vadd.f32 %v2215_v42, %v918_v16  ;;  %v707_v32 = vpop.f32.mrf.mxu0  ;;  %v835_v33 = vpop.f32.mrf.mxu1 }
 0x12f   : > { %v1055_v24 = vmax.f32 %v991_v14, 0.0  ;;  %v1087_v25 = vmax.f32 %v1023_v15, 0.0  ;;  %v1021_v27 = vadd.f32 %v2215_v42, %v950_v17  ;;  %1373 = vst.msk [vmem:[%s2228_s8 + $0x3c] sm:$0xf] %vm1357_vm0, %v1685_v18  ;;  %v921_v30 = vmul.f32 %v1809_v22, %v2210_v40 }
 0x130   : > { %1405 = vst.msk [vmem:[%s2228_s8 + $0xbc] sm:$0xf] %vm1357_vm0, %v1717_v19  ;;  %v1683_v28 = vpack.c.bf16 %v1050_v20, %v1050_v20  ;;  %v1715_v29 = vpack.c.bf16 %v1082_v21, %v1082_v21  ;;  %v953_v31 = vmul.f32 %v1841_v23, %v2210_v40  ;;  %v1053_v36 = vmax.f32 %v989_v26, 0.0  ;;  %v1812_v44 = vpop.f32.mrf.mxu0  ;;  %v1844_v45 = vpop.f32.mrf.mxu1 }
 0x131   : > { %v1688_v34 = vpack.c.bf16 %v1055_v24, %v1055_v24  ;;  %v1720_v35 = vpack.c.bf16 %v1087_v25, %v1087_v25  ;;  %v1085_v37 = vmax.f32 %v1021_v27, 0.0  ;;  %v992_v38 = vadd.f32 %v2215_v42, %v921_v30 }
 0x132   : > { %1371 = vst.msk [vmem:[%s2228_s8 + $0x34] sm:$0xf] %vm1357_vm0, %v1683_v28  ;;  %1403 = vst.msk [vmem:[%s2228_s8 + $0xb4] sm:$0xf] %vm1357_vm0, %v1715_v29  ;;  %v1024_v39 = vadd.f32 %v2215_v42, %v953_v31  ;;  %v919_v41 = vmul.f32 %v2210_v40, %v707_v32  ;;  %v951_v43 = vmul.f32 %v2210_v40, %v835_v33  ;;  %v720_v54 = vpop.f32.mrf.mxu0  ;;  %v848_v55 = vpop.f32.mrf.mxu1 }
 0x133   : > { %1376 = vst.msk [vmem:[%s2228_s8 + $0x48] sm:$0xf] %vm1357_vm0, %v1688_v34  ;;  %1408 = vst.msk [vmem:[%s2228_s8 + $0xc8] sm:$0xf] %vm1357_vm0, %v1720_v35  ;;  %v1686_v46 = vpack.c.bf16 %v1053_v36, %v1053_v36  ;;  %v1718_v47 = vpack.c.bf16 %v1085_v37, %v1085_v37  ;;  %v924_v48 = vmul.f32 %v1812_v44, %v2210_v40  ;;  %v1056_v50 = vmax.f32 %v992_v38, 0.0 }
 0x134   : > { %v956_v49 = vmul.f32 %v1844_v45, %v2210_v40  ;;  %v1088_v51 = vmax.f32 %v1024_v39, 0.0  ;;  %v990_v52 = vadd.f32 %v2215_v42, %v919_v41  ;;  %v1022_v53 = vadd.f32 %v2215_v42, %v951_v43  ;;  %v1813_v0 = vpop.f32.mrf.mxu0  ;;  %v1845_v1 = vpop.f32.mrf.mxu1 }
 0x135   : > { %1374 = vst.msk [vmem:[%s2228_s8 + $0x40] sm:$0xf] %vm1357_vm0, %v1686_v46  ;;  %1406 = vst.msk [vmem:[%s2228_s8 + $0xc0] sm:$0xf] %vm1357_vm0, %v1718_v47  ;;  %v995_v56 = vadd.f32 %v2215_v42, %v924_v48  ;;  %v922_v58 = vmul.f32 %v2210_v40, %v720_v54  ;;  %v954_v59 = vmul.f32 %v2210_v40, %v848_v55 }
 0x136   : > { %v1027_v57 = vadd.f32 %v2215_v42, %v956_v49  ;;  %v1689_v60 = vpack.c.bf16 %v1056_v50, %v1056_v50  ;;  %v1721_v61 = vpack.c.bf16 %v1088_v51, %v1088_v51  ;;  %v1054_v62 = vmax.f32 %v990_v52, 0.0  ;;  %v723_v10 = vpop.f32.mrf.mxu0  ;;  %v851_v11 = vpop.f32.mrf.mxu1 }
 0x137   : > { %v1086_v63 = vmax.f32 %v1022_v53, 0.0  ;;  %v1059_v2 = vmax.f32 %v995_v56, 0.0  ;;  %v993_v4 = vadd.f32 %v2215_v42, %v922_v58  ;;  %v1025_v5 = vadd.f32 %v2215_v42, %v954_v59 }
 0x138   : > { %v1091_v3 = vmax.f32 %v1027_v57, 0.0  ;;  %1377 = vst.msk [vmem:[%s2228_s8 + $0x4c] sm:$0xf] %vm1357_vm0, %v1689_v60  ;;  %1409 = vst.msk [vmem:[%s2228_s8 + $0xcc] sm:$0xf] %vm1357_vm0, %v1721_v61  ;;  %v1687_v6 = vpack.c.bf16 %v1054_v62, %v1054_v62  ;;  %v925_v8 = vmul.f32 %v1813_v0, %v2210_v40  ;;  %v957_v9 = vmul.f32 %v1845_v1, %v2210_v40  ;;  %v1816_v20 = vpop.f32.mrf.mxu0  ;;  %v1848_v21 = vpop.f32.mrf.mxu1 }
 0x139   : > { %v1719_v7 = vpack.c.bf16 %v1086_v63, %v1086_v63  ;;  %v1692_v12 = vpack.c.bf16 %v1059_v2, %v1059_v2  ;;  %v1057_v14 = vmax.f32 %v993_v4, 0.0  ;;  %v1089_v15 = vmax.f32 %v1025_v5, 0.0 }
 0x13a   : > { %v1724_v13 = vpack.c.bf16 %v1091_v3, %v1091_v3  ;;  %1375 = vst.msk [vmem:[%s2228_s8 + $0x44] sm:$0xf] %vm1357_vm0, %v1687_v6  ;;  %v996_v16 = vadd.f32 %v2215_v42, %v925_v8  ;;  %v1028_v17 = vadd.f32 %v2215_v42, %v957_v9  ;;  %v923_v18 = vmul.f32 %v2210_v40, %v723_v10  ;;  %v736_v30 = vpop.f32.mrf.mxu0  ;;  %v864_v31 = vpop.f32.mrf.mxu1 }
 0x13b   : > { %1407 = vst.msk [vmem:[%s2228_s8 + $0xc4] sm:$0xf] %vm1357_vm0, %v1719_v7  ;;  %v955_v19 = vmul.f32 %v2210_v40, %v851_v11  ;;  %1380 = vst.msk [vmem:[%s2228_s8 + $0x58] sm:$0xf] %vm1357_vm0, %v1692_v12  ;;  %v1690_v22 = vpack.c.bf16 %v1057_v14, %v1057_v14  ;;  %v1722_v23 = vpack.c.bf16 %v1089_v15, %v1089_v15 }
 0x13c   : > { %1412 = vst.msk [vmem:[%s2228_s8 + $0xd8] sm:$0xf] %vm1357_vm0, %v1724_v13  ;;  %v928_v24 = vmul.f32 %v1816_v20, %v2210_v40  ;;  %v960_v25 = vmul.f32 %v1848_v21, %v2210_v40  ;;  %v1060_v26 = vmax.f32 %v996_v16, 0.0  ;;  %v1092_v27 = vmax.f32 %v1028_v17, 0.0  ;;  %v1817_v41 = vpop.f32.mrf.mxu0  ;;  %v1849_v43 = vpop.f32.mrf.mxu1 }
 0x13d   : > { %v994_v28 = vadd.f32 %v2215_v42, %v923_v18  ;;  %v1026_v29 = vadd.f32 %v2215_v42, %v955_v19  ;;  %1378 = vst.msk [vmem:[%s2228_s8 + $0x50] sm:$0xf] %vm1357_vm0, %v1690_v22  ;;  %1410 = vst.msk [vmem:[%s2228_s8 + $0xd0] sm:$0xf] %vm1357_vm0, %v1722_v23  ;;  %v926_v34 = vmul.f32 %v2210_v40, %v736_v30 }
 0x13e   : > { %v999_v32 = vadd.f32 %v2215_v42, %v928_v24  ;;  %v1031_v33 = vadd.f32 %v2215_v42, %v960_v25  ;;  %v958_v35 = vmul.f32 %v2210_v40, %v864_v31  ;;  %v1693_v36 = vpack.c.bf16 %v1060_v26, %v1060_v26  ;;  %v739_v52 = vpop.f32.mrf.mxu0  ;;  %v867_v53 = vpop.f32.mrf.mxu1 }
 0x13f   : > { %v1725_v37 = vpack.c.bf16 %v1092_v27, %v1092_v27  ;;  %v1058_v38 = vmax.f32 %v994_v28, 0.0  ;;  %v1090_v39 = vmax.f32 %v1026_v29, 0.0  ;;  %v997_v46 = vadd.f32 %v2215_v42, %v926_v34 }
 0x140   : > { %v1063_v44 = vmax.f32 %v999_v32, 0.0  ;;  %v1095_v45 = vmax.f32 %v1031_v33, 0.0  ;;  %v1029_v47 = vadd.f32 %v2215_v42, %v958_v35  ;;  %1381 = vst.msk [vmem:[%s2228_s8 + $0x5c] sm:$0xf] %vm1357_vm0, %v1693_v36  ;;  %v929_v50 = vmul.f32 %v1817_v41, %v2210_v40  ;;  %v1820_v62 = vpop.f32.mrf.mxu0  ;;  %v1852_v63 = vpop.f32.mrf.mxu1 }
 0x141   : > { %1413 = vst.msk [vmem:[%s2228_s8 + $0xdc] sm:$0xf] %vm1357_vm0, %v1725_v37  ;;  %v1691_v48 = vpack.c.bf16 %v1058_v38, %v1058_v38  ;;  %v1723_v49 = vpack.c.bf16 %v1090_v39, %v1090_v39  ;;  %v961_v51 = vmul.f32 %v1849_v43, %v2210_v40  ;;  %v1061_v56 = vmax.f32 %v997_v46, 0.0 }
 0x142   : > { %v1696_v54 = vpack.c.bf16 %v1063_v44, %v1063_v44  ;;  %v1728_v55 = vpack.c.bf16 %v1095_v45, %v1095_v45  ;;  %v1093_v57 = vmax.f32 %v1029_v47, 0.0  ;;  %v1000_v58 = vadd.f32 %v2215_v42, %v929_v50  ;;  %v752_v8 = vpop.f32.mrf.mxu0  ;;  %v880_v9 = vpop.f32.mrf.mxu1 }
 0x143   : > { %1379 = vst.msk [vmem:[%s2228_s8 + $0x54] sm:$0xf] %vm1357_vm0, %v1691_v48  ;;  %1411 = vst.msk [vmem:[%s2228_s8 + $0xd4] sm:$0xf] %vm1357_vm0, %v1723_v49  ;;  %v1032_v59 = vadd.f32 %v2215_v42, %v961_v51  ;;  %v927_v60 = vmul.f32 %v2210_v40, %v739_v52  ;;  %v959_v61 = vmul.f32 %v2210_v40, %v867_v53 }
 0x144   : > { %1384 = vst.msk [vmem:[%s2228_s8 + $0x68] sm:$0xf] %vm1357_vm0, %v1696_v54  ;;  %1416 = vst.msk [vmem:[%s2228_s8 + $0xe8] sm:$0xf] %vm1357_vm0, %v1728_v55  ;;  %v1694_v0 = vpack.c.bf16 %v1061_v56, %v1061_v56  ;;  %v1726_v1 = vpack.c.bf16 %v1093_v57, %v1093_v57  ;;  %v932_v2 = vmul.f32 %v1820_v62, %v2210_v40  ;;  %v1064_v4 = vmax.f32 %v1000_v58, 0.0  ;;  %v1821_v18 = vpop.f32.mrf.mxu0  ;;  %v1853_v19 = vpop.f32.mrf.mxu1 }
 0x145   : > { %v964_v3 = vmul.f32 %v1852_v63, %v2210_v40  ;;  %v1096_v5 = vmax.f32 %v1032_v59, 0.0  ;;  %v998_v6 = vadd.f32 %v2215_v42, %v927_v60  ;;  %v1030_v7 = vadd.f32 %v2215_v42, %v959_v61 }
 0x146   : > { %1382 = vst.msk [vmem:[%s2228_s8 + $0x60] sm:$0xf] %vm1357_vm0, %v1694_v0  ;;  %1414 = vst.msk [vmem:[%s2228_s8 + $0xe0] sm:$0xf] %vm1357_vm0, %v1726_v1  ;;  %v1003_v10 = vadd.f32 %v2215_v42, %v932_v2  ;;  %v930_v12 = vmul.f32 %v2210_v40, %v752_v8  ;;  %v962_v13 = vmul.f32 %v2210_v40, %v880_v9  ;;  %v755_v28 = vpop.f32.mrf.mxu0  ;;  %v883_v29 = vpop.f32.mrf.mxu1 }
 0x147   : > { %v1035_v11 = vadd.f32 %v2215_v42, %v964_v3  ;;  %v1697_v14 = vpack.c.bf16 %v1064_v4, %v1064_v4  ;;  %v1729_v15 = vpack.c.bf16 %v1096_v5, %v1096_v5  ;;  %v1062_v16 = vmax.f32 %v998_v6, 0.0 }
 0x148   : > { %v1094_v17 = vmax.f32 %v1030_v7, 0.0  ;;  %v1067_v20 = vmax.f32 %v1003_v10, 0.0  ;;  %v1001_v22 = vadd.f32 %v2215_v42, %v930_v12  ;;  %v1033_v23 = vadd.f32 %v2215_v42, %v962_v13 }
 0x149   : > { %v1099_v21 = vmax.f32 %v1035_v11, 0.0  ;;  %1385 = vst.msk [vmem:[%s2228_s8 + $0x6c] sm:$0xf] %vm1357_vm0, %v1697_v14  ;;  %1417 = vst.msk [vmem:[%s2228_s8 + $0xec] sm:$0xf] %vm1357_vm0, %v1729_v15  ;;  %v1695_v24 = vpack.c.bf16 %v1062_v16, %v1062_v16  ;;  %v933_v26 = vmul.f32 %v1821_v18, %v2210_v40  ;;  %v965_v27 = vmul.f32 %v1853_v19, %v2210_v40 }
 0x14a   : > { %v1727_v25 = vpack.c.bf16 %v1094_v17, %v1094_v17  ;;  %v1700_v30 = vpack.c.bf16 %v1067_v20, %v1067_v20  ;;  %v1065_v32 = vmax.f32 %v1001_v22, 0.0  ;;  %v1097_v33 = vmax.f32 %v1033_v23, 0.0 }
 0x14b   : > { %v1732_v31 = vpack.c.bf16 %v1099_v21, %v1099_v21  ;;  %1383 = vst.msk [vmem:[%s2228_s8 + $0x64] sm:$0xf] %vm1357_vm0, %v1695_v24  ;;  %v1004_v34 = vadd.f32 %v2215_v42, %v933_v26  ;;  %v1036_v35 = vadd.f32 %v2215_v42, %v965_v27  ;;  %v931_v36 = vmul.f32 %v2210_v40, %v755_v28 }
 0x14c   : > { %1415 = vst.msk [vmem:[%s2228_s8 + $0xe4] sm:$0xf] %vm1357_vm0, %v1727_v25  ;;  %v963_v37 = vmul.f32 %v2210_v40, %v883_v29  ;;  %1388 = vst.msk [vmem:[%s2228_s8 + $0x78] sm:$0xf] %vm1357_vm0, %v1700_v30  ;;  %v1698_v38 = vpack.c.bf16 %v1065_v32, %v1065_v32  ;;  %v1730_v39 = vpack.c.bf16 %v1097_v33, %v1097_v33 }
 0x14d   : > { %1420 = vst.msk [vmem:[%s2228_s8 + $0xf8] sm:$0xf] %vm1357_vm0, %v1732_v31  ;;  %v1068_v41 = vmax.f32 %v1004_v34, 0.0  ;;  %v1100_v43 = vmax.f32 %v1036_v35, 0.0  ;;  %v1002_v44 = vadd.f32 %v2215_v42, %v931_v36 }
 0x14e   : > { %v1034_v45 = vadd.f32 %v2215_v42, %v963_v37  ;;  %1386 = vst.msk [vmem:[%s2228_s8 + $0x70] sm:$0xf] %vm1357_vm0, %v1698_v38  ;;  %1418 = vst.msk [vmem:[%s2228_s8 + $0xf0] sm:$0xf] %vm1357_vm0, %v1730_v39 }
 0x14f   : > { %v1701_v40 = vpack.c.bf16 %v1068_v41, %v1068_v41  ;;  %v1733_v46 = vpack.c.bf16 %v1100_v43, %v1100_v43  ;;  %v1066_v47 = vmax.f32 %v1002_v44, 0.0 }
 0x150   : > { %v1098_v48 = vmax.f32 %v1034_v45, 0.0 }
 0x151   : > { %1389 = vst.msk [vmem:[%s2228_s8 + $0x7c] sm:$0xf] %vm1357_vm0, %v1701_v40  ;;  %1421 = vst.msk [vmem:[%s2228_s8 + $0xfc] sm:$0xf] %vm1357_vm0, %v1733_v46  ;;  %v1699_v49 = vpack.c.bf16 %v1066_v47, %v1066_v47 }
 0x152   : > { %v1731_v50 = vpack.c.bf16 %v1098_v48, %v1098_v48 }
 0x153   : > { %1387 = vst.msk [vmem:[%s2228_s8 + $0x74] sm:$0xf] %vm1357_vm0, %v1699_v49 }
 0x154   : > { %1419 = vst.msk [vmem:[%s2228_s8 + $0xf4] sm:$0xf] %vm1357_vm0, %v1731_v50 }
 0x155 PF: > { %s17_s20 = sadd.s32 1, %s2045_s20   ;;  %s2504_s15 = smov %s2029_s16 }
 0x156   : > { %p14_p8 = scmp.ge.s32.totalorder %s17_s20, 4   ;;  %s2505_s16 = smov %s2033_s17 }
 0x157   : > { %s2506_s17 = smov %s2124_s27  ;;  %s2507_s18 = smov %s2041_s19 }
 0x158   : > { %s2508_s19 = smov %s2510_s22  ;;  %16 = sbr.rel (!%p14_p8) target bundleno = 4 (0x4), region = 85 }
 0x15d   :  { %1450 = vsyncpa [#allocation3], 1 }
 0x15e   :  { %1452 = vsyncpa [#allocation3 + $0x1], 1 }

</bundles_post_ra>
